<compile_context>
chip_gen: v7x
topology: tpu7x:2x2x1
jax: 0.10.0
libtpu: 0.0.40
codegen_flags: <defaults>
</compile_context>

<pallas_src>
import functools
import math

import jax
import jax.numpy as jnp
from jax.experimental import pallas as pl
from jax.experimental.pallas import tpu as pltpu


# ----------------------------- kernel helpers --------------------------------

def _layernorm(x, g, b, eps=1e-6):
    # torch.nn.LayerNorm(eps=1e-6): biased variance over the last dim.
    mu = jnp.mean(x, axis=-1, keepdims=True)
    xc = x - mu
    var = jnp.mean(xc * xc, axis=-1, keepdims=True)
    return xc * jax.lax.rsqrt(var + eps) * g + b


# ----------------------------- embedding kernel -------------------------------

def embed_kernel(patches_ref, pw_ref, pb_ref, cls_ref, pos_ref, out_ref):
    """Conv2d(stride==kernel) as a matmul, prepend cls, add pos, pad seq."""
    tb, n, _ = patches_ref.shape
    hidden = pw_ref.shape[-1]
    s_pad = out_ref.shape[1]

    pe = jnp.einsum('bnp,ph->bnh', patches_ref[...], pw_ref[...],
                    preferred_element_type=jnp.float32) + pb_ref[...]
    pos = pos_ref[...]                                        # (1, s_pad, H)
    cls = jnp.broadcast_to(cls_ref[...], (tb, 1, hidden))

    out_ref[:, 0:1, :] = cls + pos[:, 0:1, :]
    out_ref[:, 1:n + 1, :] = pe + pos[:, 1:n + 1, :]
    if n + 1 < s_pad:                      # zero the sublane-padding rows
        out_ref[:, n + 1:, :] = jnp.zeros(
            (tb, s_pad - n - 1, hidden), jnp.float32)
    # TODO(synk): Embeddings Dropout is identity here (inference semantics).


# ------------------------------ fused encoder kernel --------------------------

def encoder_kernel(x_emb_ref,
                   ln1g_ref, ln1b_ref, wqkv_ref, bqkv_ref, wo_ref, bo_ref,
                   ln2g_ref, ln2b_ref, w1_ref, b1_ref, w2_ref, b2_ref,
                   encg_ref, encb_ref,
                   out_ref, x_acc, ctx_sc,
                   *, num_heads, seq_len):
    """Grid = (batch_tile, layer). One encoder Block per step; x lives in VMEM."""
    layer = pl.program_id(1)
    last_layer = pl.num_programs(1) - 1

    tb, s_pad, hidden = x_emb_ref.shape
    rows = tb * s_pad
    hd = hidden // num_heads
    mm_dtype = wqkv_ref.dtype            # bf16 matmul operands, f32 accumulate

    # Load embeddings into the resident accumulator at the first layer step.
    @pl.when(layer == 0)
    def _():
        x_acc[...] = x_emb_ref[...].reshape(rows, hidden)

    x = x_acc[...]                                            # (rows, H) f32

    # ------------------------- multi-head self attention ---------------------
    xn = _layernorm(x, ln1g_ref[0], ln1b_ref[0])

    # Fused QKV projection as one big 2-D matmul (rows = tb * s_pad).
    # 1/sqrt(head_dim) is already folded into the Q-third of Wqkv / bqkv.
    qkv = jnp.dot(xn.astype(mm_dtype), wqkv_ref[0],
                  preferred_element_type=jnp.float32) + bqkv_ref[0]
    qkv = qkv.astype(mm_dtype)                                # single cast
    q3 = qkv[:, 0:hidden].reshape(tb, s_pad, hidden)
    k3 = qkv[:, hidden:2 * hidden].reshape(tb, s_pad, hidden)
    v3 = qkv[:, 2 * hidden:3 * hidden].reshape(tb, s_pad, hidden)

    # Key-padding mask (static no-op when seq_len == s_pad).
    if seq_len < s_pad:
        key_ok = jax.lax.broadcasted_iota(jnp.int32, (1, 1, s_pad), 2) < seq_len
    else:
        key_ok = None

    for hi in range(num_heads):                 # static unroll over heads
        sl = slice(hi * hd, (hi + 1) * hd)
        s = jnp.einsum('bqd,bkd->bqk', q3[:, :, sl], k3[:, :, sl],
                       preferred_element_type=jnp.float32)
        if key_ok is not None:
            s = jnp.where(key_ok, s, -1e30)
        s = s - jnp.max(s, axis=-1, keepdims=True)
        p = jnp.exp(s)
        p = p * pl.reciprocal(jnp.sum(p, axis=-1, keepdims=True), approx=True)
        ctx_h = jnp.einsum('bqk,bkd->bqd', p.astype(mm_dtype), v3[:, :, sl],
                           preferred_element_type=jnp.float32)
        # Per-head context goes straight into a bf16 VMEM slab (bounded live
        # ranges, no register-level concat).
        ctx_sc[:, sl] = ctx_h.reshape(rows, hd).astype(mm_dtype)

    # Single full-width output projection over all heads.
    attn_out = jnp.dot(ctx_sc[...], wo_ref[0],
                       preferred_element_type=jnp.float32) + bo_ref[0]
    # TODO(synk): attn_dropout / proj_dropout are identity (inference).
    x = x + attn_out

    # --------------------------------- MLP ------------------------------------
    xn2 = _layernorm(x, ln2g_ref[0], ln2b_ref[0])
    h1 = jnp.dot(xn2.astype(mm_dtype), w1_ref[0],
                 preferred_element_type=jnp.float32) + b1_ref[0]
    # TODO(synk): torch F.gelu defaults to exact erf GELU; tanh approximation
    # used here (Mosaic-friendly EUP path), ~1e-3 elementwise difference.
    h1 = jax.nn.gelu(h1, approximate=True).astype(mm_dtype)   # bf16 right away
    mlp_out = jnp.dot(h1, w2_ref[0],
                      preferred_element_type=jnp.float32) + b2_ref[0]
    x = x + mlp_out

    x_acc[...] = x

    # ----------- final encoder LayerNorm fused into the last layer -----------
    @pl.when(layer == last_layer)
    def _():
        out_ref[...] = _layernorm(x, encg_ref[0], encb_ref[0]).reshape(
            tb, s_pad, hidden)


# --------------------------------- wrapper ------------------------------------

def extract_patches(x, patch):
    """NCHW image -> (B, n_patches, C*patch*patch); matches Conv2d+flatten+transpose."""
    B, C, H, W = x.shape
    hp, wp = H // patch, W // patch
    x = x.reshape(B, C, hp, patch, wp, patch)
    x = x.transpose(0, 2, 4, 1, 3, 5)          # (B, hp, wp, C, p, p)
    return x.reshape(B, hp * wp, C * patch * patch)


def _pick_batch_tile(B, requested=None, cap=8):
    if requested is not None:
        assert B % requested == 0, (B, requested)
        return requested
    for tb in range(min(B, cap), 0, -1):
        if B % tb == 0:
            return tb
    return 1


def _vmem_budget_bytes():
    """~80% of physical VMEM per generation (v5e/v6e ~102 MiB, v7x ~51 MiB)."""
    try:
        info = pltpu.get_tpu_info()
        cap = getattr(info, 'vmem_capacity_bytes', None)
        if not cap:
            cap = getattr(info, 'vmem_bytes', None)
        if cap:
            return int(min(cap * 0.8, 110 * 1024 * 1024))
    except Exception:
        pass
    return 48 * 1024 * 1024                    # conservative fallback


def transformer_forward(x, params, *, patch, num_heads, batch_tile=None):
    mm_dtype = params['wqkv'].dtype

    patches = extract_patches(x, patch).astype(mm_dtype)   # bf16: halves DMA
    B, N, P = patches.shape
    H = params['patch_b'].shape[-1]
    L = params['wqkv'].shape[0]
    M = params['w1'].shape[-1]
    hd = H // num_heads
    seq = N + 1
    s_pad = ((seq + 7) // 8) * 8               # sublane-align the sequence dim

    pos_pad = jnp.zeros((1, s_pad, H), jnp.float32).at[:, :seq, :].set(
        params['pos'])

    # Fold 1/sqrt(head_dim) into the Q-third of Wqkv / bqkv (prep-time, once).
    scale = 1.0 / math.sqrt(hd)
    qkv_scale = jnp.concatenate(
        [jnp.full((H,), scale, jnp.float32), jnp.ones((2 * H,), jnp.float32)])
    wqkv_s = (params['wqkv'].astype(jnp.float32) * qkv_scale).astype(mm_dtype)
    bqkv_s = params['bqkv'] * qkv_scale

    # On v7x keep B // tb >= 2 so both TensorCores get batch tiles.
    tb = _pick_batch_tile(B, batch_tile)
    vmem_budget = _vmem_budget_bytes()

    const3 = lambda b, l: (0, 0, 0)
    batch3 = lambda b, l: (b, 0, 0)
    layer3 = lambda b, l: (l, 0, 0)

    # ------------------------- 1) embedding kernel ---------------------------
    x_emb = pl.pallas_call(
        embed_kernel,
        out_shape=jax.ShapeDtypeStruct((B, s_pad, H), jnp.float32),
        grid_spec=pltpu.PrefetchScalarGridSpec(
            num_scalar_prefetch=0,
            grid=(B // tb,),
            in_specs=[
                pl.BlockSpec((tb, N, P), lambda b: (b, 0, 0)),     # patches
                pl.BlockSpec((P, H), lambda b: (0, 0)),            # patch_w
                pl.BlockSpec((1, 1, H), lambda b: (0, 0, 0)),      # patch_b
                pl.BlockSpec((1, 1, H), lambda b: (0, 0, 0)),      # cls
                pl.BlockSpec((1, s_pad, H), lambda b: (0, 0, 0)),  # pos (padded)
            ],
            out_specs=pl.BlockSpec((tb, s_pad, H), lambda b: (b, 0, 0))),
        compiler_params=pltpu.CompilerParams(
            dimension_semantics=("parallel",),
            vmem_limit_bytes=vmem_budget),
    )(patches, params['patch_w'], params['patch_b'], params['cls'], pos_pad)

    # ------------------------- 2) fused encoder kernel -----------------------
    in_specs = [
        pl.BlockSpec((tb, s_pad, H), batch3),             # x_emb
        pl.BlockSpec((1, 1, H), layer3),                  # ln1 gamma
        pl.BlockSpec((1, 1, H), layer3),                  # ln1 beta
        pl.BlockSpec((1, H, 3 * H), layer3),              # Wqkv (scaled)
        pl.BlockSpec((1, 1, 3 * H), layer3),              # bqkv (scaled)
        pl.BlockSpec((1, H, H), layer3),                  # Wo
        pl.BlockSpec((1, 1, H), layer3),                  # bo
        pl.BlockSpec((1, 1, H), layer3),                  # ln2 gamma
        pl.BlockSpec((1, 1, H), layer3),                  # ln2 beta
        pl.BlockSpec((1, H, M), layer3),                  # W1
        pl.BlockSpec((1, 1, M), layer3),                  # b1
        pl.BlockSpec((1, M, H), layer3),                  # W2
        pl.BlockSpec((1, 1, H), layer3),                  # b2
        pl.BlockSpec((1, 1, H), const3),                  # encoder LN gamma
        pl.BlockSpec((1, 1, H), const3),                  # encoder LN beta
    ]
    out_spec = pl.BlockSpec((tb, s_pad, H), batch3)

    kernel = functools.partial(encoder_kernel, num_heads=num_heads, seq_len=seq)

    out_pad = pl.pallas_call(
        kernel,
        out_shape=jax.ShapeDtypeStruct((B, s_pad, H), jnp.float32),
        grid_spec=pltpu.PrefetchScalarGridSpec(
            num_scalar_prefetch=0,
            grid=(B // tb, L),
            in_specs=in_specs,
            out_specs=out_spec,
            scratch_shapes=[pltpu.VMEM((tb * s_pad, H), jnp.float32),  # x_acc
                            pltpu.VMEM((tb * s_pad, H), mm_dtype)]),   # ctx slab
        compiler_params=pltpu.CompilerParams(
            dimension_semantics=("parallel", "arbitrary"),
            vmem_limit_bytes=vmem_budget),
    )(x_emb,
      params['ln1_g'], params['ln1_b'], wqkv_s, bqkv_s,
      params['wo'], params['bo'], params['ln2_g'], params['ln2_b'],
      params['w1'], params['b1'], params['w2'], params['b2'],
      params['enc_ln_g'], params['enc_ln_b'])

    encoded = out_pad[:, :seq, :]
    attn_weights = []          # vis=False in this configuration
    return encoded, attn_weights


# ------------------------------ param init ------------------------------------

def init_params(key, *, in_channels, patch, img, hidden, mlp_dim, num_layers,
                mm_dtype=jnp.bfloat16):
    n_patches = (img // patch) * (img // patch)
    seq = n_patches + 1
    pdim = in_channels * patch * patch
    scale = 0.02
    L, H, M = num_layers, hidden, mlp_dim

    def nrm(k, shape, dtype=jnp.float32):
        return (scale * jax.random.normal(k, shape, jnp.float32)).astype(dtype)

    ks = jax.random.split(key, 12)
    params = {
        # Embeddings (conv weight flattened to (C*p*p, H), bf16 for the MXU)
        'patch_w': nrm(ks[0], (pdim, H), mm_dtype),
        'patch_b': nrm(ks[1], (1, 1, H)),
        'cls':     nrm(ks[2], (1, 1, H)),
        'pos':     nrm(ks[3], (1, seq, H)),
        # final encoder LayerNorm
        'enc_ln_g': jnp.ones((1, 1, H), jnp.float32),
        'enc_ln_b': jnp.zeros((1, 1, H), jnp.float32),
        # stacked per-layer Block parameters (leading axis = layer)
        'ln1_g': jnp.ones((L, 1, H), jnp.float32),
        'ln1_b': jnp.zeros((L, 1, H), jnp.float32),
        'wqkv':  nrm(ks[4], (L, H, 3 * H), mm_dtype),   # [Wq | Wk | Wv]
        'bqkv':  nrm(ks[5], (L, 1, 3 * H)),
        'wo':    nrm(ks[6], (L, H, H), mm_dtype),
        'bo':    nrm(ks[7], (L, 1, H)),
        'ln2_g': jnp.ones((L, 1, H), jnp.float32),
        'ln2_b': jnp.zeros((L, 1, H), jnp.float32),
        'w1':    nrm(ks[8], (L, H, M), mm_dtype),
        'b1':    nrm(ks[9], (L, 1, M)),
        'w2':    nrm(ks[10], (L, M, H), mm_dtype),
        'b2':    nrm(ks[11], (L, 1, H)),
    }
    return params


# --------------------------------- main ----------------------------------------

if __name__ == "__main__":
    B, C, IMG, PATCH = 2, 3, 16, 8
    HIDDEN, HEADS, MLP_DIM, LAYERS = 32, 4, 64, 2

    key = jax.random.PRNGKey(0)
    kx, kp = jax.random.split(key)
    x = jax.random.normal(kx, (B, C, IMG, IMG), jnp.float32)

    params = init_params(kp, in_channels=C, patch=PATCH, img=IMG,
                         hidden=HIDDEN, mlp_dim=MLP_DIM, num_layers=LAYERS)

    encoded, attn_weights = transformer_forward(
        x, params, patch=PATCH, num_heads=HEADS)
    jax.block_until_ready(encoded)

    seq = (IMG // PATCH) ** 2 + 1
    assert encoded.shape == (B, seq, HIDDEN), encoded.shape
    assert bool(jnp.all(jnp.isfinite(encoded)))
    assert attn_weights == []
    print("KERNEL_OK")
</pallas_src>

<mosaic_0001>
module attributes {stable_mosaic.version = 11 : i64} {
  func.func @embed_kernel(%arg0: i32, %arg1: memref<2x4x192xbf16, #tpu.memory_space<vmem>>, %arg2: memref<192x32xbf16, #tpu.memory_space<vmem>>, %arg3: memref<1x1x32xf32, #tpu.memory_space<vmem>>, %arg4: memref<1x1x32xf32, #tpu.memory_space<vmem>>, %arg5: memref<1x8x32xf32, #tpu.memory_space<vmem>>, %arg6: memref<2x8x32xf32, #tpu.memory_space<vmem>>) attributes {dimension_semantics = [#tpu.dimension_semantics<parallel>], iteration_bounds = array<i64: 1>, scalar_prefetch = 0 : i64, scratch_operands = 0 : i64, tpu.core_type = #tpu.core_type<tc>, window_params = [{transform_indices = @transform_0, window_bounds = array<i64: 2, 4, 192>}, {pipeline_mode = #tpu.pipeline_mode<synchronous>, transform_indices = @transform_1, window_bounds = array<i64: 192, 32>}, {pipeline_mode = #tpu.pipeline_mode<synchronous>, transform_indices = @transform_2, window_bounds = array<i64: 1, 1, 32>}, {pipeline_mode = #tpu.pipeline_mode<synchronous>, transform_indices = @transform_3, window_bounds = array<i64: 1, 1, 32>}, {pipeline_mode = #tpu.pipeline_mode<synchronous>, transform_indices = @transform_4, window_bounds = array<i64: 1, 8, 32>}, {transform_indices = @transform_5, window_bounds = array<i64: 2, 8, 32>}]} {
    %c0 = arith.constant 0 : index
    %c0_0 = arith.constant 0 : index
    %c0_1 = arith.constant 0 : index
    %0 = vector.load %arg1[%c0, %c0_0, %c0_1] : memref<2x4x192xbf16, #tpu.memory_space<vmem>>, vector<2x4x192xbf16>
    %c0_2 = arith.constant 0 : index
    %c0_3 = arith.constant 0 : index
    %1 = vector.load %arg2[%c0_2, %c0_3] : memref<192x32xbf16, #tpu.memory_space<vmem>>, vector<192x32xbf16>
    "tpu.trace_start"() <{level = 10 : i32, message = "bnp,ph->bnh"}> : () -> ()
    %cst = arith.constant dense<0.000000e+00> : vector<2x4x32xf32>
    %2 = tpu.matmul %0, %1, %cst {dimension_numbers = #tpu.dot_dimension_numbers<[2], [0], [0, 1], [1], [0, 0, 0, 1, 1, 1], [], []>} : vector<2x4x192xbf16>, vector<192x32xbf16>, vector<2x4x32xf32> -> vector<2x4x32xf32>
    "tpu.trace_stop"() : () -> ()
    %c0_4 = arith.constant 0 : index
    %c0_5 = arith.constant 0 : index
    %c0_6 = arith.constant 0 : index
    %3 = vector.load %arg3[%c0_4, %c0_5, %c0_6] : memref<1x1x32xf32, #tpu.memory_space<vmem>>, vector<1x1x32xf32>
    %4 = vector.broadcast %3 : vector<1x1x32xf32> to vector<2x4x32xf32>
    %5 = arith.addf %2, %4 : vector<2x4x32xf32>
    %c0_7 = arith.constant 0 : index
    %c0_8 = arith.constant 0 : index
    %c0_9 = arith.constant 0 : index
    %6 = vector.load %arg5[%c0_7, %c0_8, %c0_9] : memref<1x8x32xf32, #tpu.memory_space<vmem>>, vector<1x8x32xf32>
    %c0_10 = arith.constant 0 : index
    %c0_11 = arith.constant 0 : index
    %c0_12 = arith.constant 0 : index
    %7 = vector.load %arg4[%c0_10, %c0_11, %c0_12] : memref<1x1x32xf32, #tpu.memory_space<vmem>>, vector<1x1x32xf32>
    %8 = vector.shape_cast %7 : vector<1x1x32xf32> to vector<1x1x32xf32>
    %9 = vector.broadcast %8 : vector<1x1x32xf32> to vector<2x1x32xf32>
    %10 = vector.extract_strided_slice %6 {offsets = [0, 0, 0], sizes = [1, 1, 32], strides = [1, 1, 1]} : vector<1x8x32xf32> to vector<1x1x32xf32>
    %11 = vector.broadcast %10 : vector<1x1x32xf32> to vector<2x1x32xf32>
    %12 = arith.addf %9, %11 : vector<2x1x32xf32>
    %c0_13 = arith.constant 0 : index
    %c0_14 = arith.constant 0 : index
    %c0_15 = arith.constant 0 : index
    %13 = vector.load %arg6[%c0_13, %c0_14, %c0_15] : memref<2x8x32xf32, #tpu.memory_space<vmem>>, vector<2x1x32xf32>
    tpu.vector_store %arg6[%c0_13, %c0_14, %c0_15], %12 {strides = array<i32>} : memref<2x8x32xf32, #tpu.memory_space<vmem>>, vector<2x1x32xf32>,
    %14 = vector.extract_strided_slice %6 {offsets = [0, 1, 0], sizes = [1, 4, 32], strides = [1, 1, 1]} : vector<1x8x32xf32> to vector<1x4x32xf32>
    %15 = vector.broadcast %14 : vector<1x4x32xf32> to vector<2x4x32xf32>
    %16 = arith.addf %5, %15 : vector<2x4x32xf32>
    %c0_16 = arith.constant 0 : index
    %c1 = arith.constant 1 : index
    %c0_17 = arith.constant 0 : index
    %17 = vector.load %arg6[%c0_16, %c1, %c0_17] : memref<2x8x32xf32, #tpu.memory_space<vmem>>, vector<2x4x32xf32>
    tpu.vector_store %arg6[%c0_16, %c1, %c0_17], %16 {strides = array<i32>} : memref<2x8x32xf32, #tpu.memory_space<vmem>>, vector<2x4x32xf32>,
    %cst_18 = arith.constant 0.000000e+00 : f32
    %18 = vector.broadcast %cst_18 : f32 to vector<2x3x32xf32>
    %c0_19 = arith.constant 0 : index
    %c5 = arith.constant 5 : index
    %c0_20 = arith.constant 0 : index
    %19 = vector.load %arg6[%c0_19, %c5, %c0_20] : memref<2x8x32xf32, #tpu.memory_space<vmem>>, vector<2x3x32xf32>
    tpu.vector_store %arg6[%c0_19, %c5, %c0_20], %18 {strides = array<i32>} : memref<2x8x32xf32, #tpu.memory_space<vmem>>, vector<2x3x32xf32>,
    return
  }
  func.func @transform_0(%arg0: i32) -> (i32, i32, i32) {
    %c0_i32 = arith.constant 0 : i32
    %c0_i32_0 = arith.constant 0 : i32
    %c0_i32_1 = arith.constant 0 : i32
    return %arg0, %c0_i32, %c0_i32_0 : i32, i32, i32
  }
  func.func @transform_1(%arg0: i32) -> (i32, i32) {
    %c0_i32 = arith.constant 0 : i32
    %c0_i32_0 = arith.constant 0 : i32
    %c0_i32_1 = arith.constant 0 : i32
    return %c0_i32, %c0_i32_0 : i32, i32
  }
  func.func @transform_2(%arg0: i32) -> (i32, i32, i32) {
    %c0_i32 = arith.constant 0 : i32
    %c0_i32_0 = arith.constant 0 : i32
    %c0_i32_1 = arith.constant 0 : i32
    %c0_i32_2 = arith.constant 0 : i32
    return %c0_i32, %c0_i32_0, %c0_i32_1 : i32, i32, i32
  }
  func.func @transform_3(%arg0: i32) -> (i32, i32, i32) {
    %c0_i32 = arith.constant 0 : i32
    %c0_i32_0 = arith.constant 0 : i32
    %c0_i32_1 = arith.constant 0 : i32
    %c0_i32_2 = arith.constant 0 : i32
    return %c0_i32, %c0_i32_0, %c0_i32_1 : i32, i32, i32
  }
  func.func @transform_4(%arg0: i32) -> (i32, i32, i32) {
    %c0_i32 = arith.constant 0 : i32
    %c0_i32_0 = arith.constant 0 : i32
    %c0_i32_1 = arith.constant 0 : i32
    %c0_i32_2 = arith.constant 0 : i32
    return %c0_i32, %c0_i32_0, %c0_i32_1 : i32, i32, i32
  }
  func.func @transform_5(%arg0: i32) -> (i32, i32, i32) {
    %c0_i32 = arith.constant 0 : i32
    %c0_i32_0 = arith.constant 0 : i32
    %c0_i32_1 = arith.constant 0 : i32
    return %arg0, %c0_i32, %c0_i32_0 : i32, i32, i32
  }
}

</mosaic_0001>

<bundles_post_ra>
// kernel: tpu_custom_call.1
= control target key start
LH: loop header
LB: loop body
LE: loop exit
PB: predicated region body
PF: predicated region fallthrough
CT: control target
= control target key end

     0   :  { %v286_v1 = vmov 0   ;;  %s381_s0 = inlined_call_operand.vmem [shape: bf16[2,4,192], index: 0, kind: input, shape index: {}]   ;;  %s382_s1 = inlined_call_operand.vmem [shape: bf16[192,32], index: 1, kind: input, shape index: {}]   ;;  %s383_s2 = inlined_call_operand.vmem [shape: f32[1,1,32], index: 2, kind: input, shape index: {}]   ;;  %s384_s3 = inlined_call_operand.vmem [shape: f32[1,1,32], index: 3, kind: input, shape index: {}]   ;;  %s385_s4 = inlined_call_operand.vmem [shape: f32[1,8,32], index: 4, kind: input, shape index: {}]   ;;  %s386_s5 = inlined_call_operand.hbm [shape: f32[2,8,32], index: 5, kind: output, shape index: {}]  }
   0x1   :  { %v248_v0 = vld [vmem:[%s382_s1] sm:$0xff]   ;;  %144 = vmatprep.subr.bf16.mxu0 %v286_v1  ;;  %v249_v2 = vld [vmem:[%s382_s1 + $0x8] sm:$0xff]   ;;  %v250_v3 = vld [vmem:[%s382_s1 + $0x10] sm:$0xff]  }
   0x2   :  { %145 = vmatpush1.bf16.msra.mxu0 %v248_v0  ;;  %v251_v4 = vld [vmem:[%s382_s1 + $0x18] sm:$0xff]  }
   0x3   :  { %146 = vmatprep.subr.bf16.mxu0 %v286_v1 }
   0x6   :  { %147 = vmatpush1.bf16.msra.mxu0 %v249_v2 }
   0x7   :  { %148 = vmatprep.subr.bf16.mxu0 %v286_v1 }
   0xa   :  { %149 = vmatpush1.bf16.msra.mxu0 %v250_v3 }
   0xb   :  { %150 = vmatprep.subr.bf16.mxu0 %v286_v1 }
   0xc   :  { %10 = vsyncpa [#allocation3], 0  ;;  %v252_v5 = vld [vmem:[%s382_s1 + $0x20] sm:$0xff]   ;;  %v253_v7 = vld [vmem:[%s382_s1 + $0x28] sm:$0xff]   ;;  %vm140_vm0 = vcmask 523264   ;;  %vm190_vm1 = vcmask 253952  }
   0xd   :  { %v261_v6 = vld.sshfl [vmem:[%s381_s0] sm:$0xff pattern:$0x76325410]  ;;  %v254_v8 = vld [vmem:[%s382_s1 + $0x30] sm:$0xff]   ;;  %v255_v10 = vld [vmem:[%s382_s1 + $0x38] sm:$0xff]   ;;  %vm208_vm2 = vcmask 256000  }
   0xe   :  { %151 = vmatpush1.bf16.msra.mxu0 %v251_v4  ;;  %v64_v9 = vcombine.high %v261_v6, %v261_v6  ;;  %v256_v11 = vld [vmem:[%s382_s1 + $0x40] sm:$0xff]   ;;  %v257_v12 = vld [vmem:[%s382_s1 + $0x48] sm:$0xff]   ;;  %v258_v13 = vld [vmem:[%s382_s1 + $0x50] sm:$0xff]   ;;  %v287_v18 = vmov 0.0   ;;  %vm195_vm3 = vcmask 1042432   ;;  %vm196_vm4 = vcmask 1046532  }
   0xf   :  { %152 = vmatprep.subr.bf16.mxu0 %v286_v1  ;;  %v259_v14 = vld [vmem:[%s382_s1 + $0x58] sm:$0xff]   ;;  %v187_v15 = vld [vmem:[%s385_s4] sm:$0xff]  ;;  %209 = vst.msk [vmem:[#allocation2 + $0x5] sm:$0x7] %vm208_vm2, %v287_v18  ;;  %210 = vst.msk [vmem:[#allocation2 + $0xd] sm:$0x7] %vm208_vm2, %v287_v18 }
  0x10   :  { %240 = vmatprep.mubr.msk.bf16.mxu0 %vm140_vm0, %v64_v9  ;;  %v188_v16 = vld [vmem:[%s384_s3] sm:$0x1]  ;;  %v194_v19 = vcombine.high %v187_v15, %v187_v15  ;;  %v241_v21 = vrot.slane %v187_v15, 9  ;;  %vm197_vm5 = vmor %vm195_vm3, %vm196_vm4  ;;  %s288_s3 = smov [#allocation2]   ;;  %vm205_vm6 = vcmask 257024  }
  0x11   :  { %v189_v17 = vadd.f32 %v188_v16, %v187_v15  ;;  %v227_v20 = vld [vmem:[%s383_s2] ss:$0 sm:$0xff]  ;;  %s216_s4 = sshll.u32 %s288_s3, 4  ;;  %s217_s4 = int_to_ptr.vmem [resolvable:$true] %s216_s4 }
  0x12   :  { %153 = vmatpush1.bf16.msra.mxu0 %v252_v5  ;;  %v200_v22 = vrot.slane %v194_v19, 5  ;;  %v138_v23 = vcombine.low %v227_v20, %v227_v20  ;;  %s262_s2 = scalar_lea.vmem %s217_s4, 256  ;;  %p267_p1 = scmp.lt.s32.totalorder %s217_s4, %s217_s4 }
  0x13   :  { %154 = vmatprep.subr.bf16.mxu0 %v286_v1  ;;  %191 = vst.msk [vmem:[#allocation2] sm:$0x1] %vm190_vm1, %v189_v17  ;;  %192 = vst.msk [vmem:[#allocation2 + $0x8] sm:$0x1] %vm190_vm1, %v189_v17  ;;  %p263_p0 = scmp.ne.s32.totalorder %s217_s4, %s262_s2  ;;  %p268_p2 = scmp.lt.s32.totalorder %s262_s2, %s262_s2 }
  0x14   :  { %v201_v25 = vsel %vm197_vm5, %v241_v21, %v200_v22 }
  0x15   :  { %p269_p3 = por %p268_p2, %p267_p1 }
  0x16   :  { %155 = vmatpush1.bf16.msra.mxu0 %v253_v7 }
  0x17   :  { %156 = vmatprep.subr.bf16.mxu0 %v286_v1  ;;  %p270_p4 = pnand %p269_p3, %p263_p0 }
  0x1a   :  { %157 = vmatpush1.bf16.msra.mxu0 %v254_v8 }
  0x1b   :  { %158 = vmatprep.subr.bf16.mxu0 %v286_v1 }
  0x1e   :  { %159 = vmatpush1.bf16.msra.mxu0 %v255_v10 }
  0x1f   :  { %160 = vmatprep.subr.bf16.mxu0 %v286_v1 }
  0x22   :  { %161 = vmatpush1.bf16.msra.mxu0 %v256_v11 }
  0x23   :  { %162 = vmatprep.subr.bf16.mxu0 %v286_v1 }
  0x26   :  { %163 = vmatpush1.bf16.msra.mxu0 %v257_v12 }
  0x27   :  { %164 = vmatprep.subr.bf16.mxu0 %v286_v1 }
  0x2a   :  { %165 = vmatpush1.bf16.msra.mxu0 %v258_v13 }
  0x2b   :  { %166 = vmatprep.subr.bf16.mxu0 %v286_v1 }
  0x2e   :  { %167 = vmatpush1.bf16.msra.mxu0 %v259_v14 }
  0x31   :  { %177 = vmatmul.mubr.bf16.vlgmr.msra.gmra.mrb[0].mxu0 %v261_v6 }
 0x104   :  { %v178_v24 = vpop.f32.mrb[0].mxu0 }
 0x105   :  { %v179_v26 = vadd.f32 %v178_v24, %v138_v23  ;;  %v180_v27 = vpop.f32.mrb[1].mxu0 }
 0x106   :  { %v181_v28 = vpop.f32.mrb[2].mxu0 }
 0x107   :  { %v185_v29 = vcombine.high %v179_v26, %v179_v26  ;;  %v203_v30 = vadd.f32 %v201_v25, %v179_v26  ;;  %v182_v31 = vpop.f32.mrb[3].mxu0 }
 0x109   :  { %v204_v32 = vadd.f32 %v201_v25, %v185_v29  ;;  %206 = vst.msk [vmem:[#allocation2 + $0x1] sm:$0xf] %vm205_vm6, %v203_v30 }
 0x10b   :  { %207 = vst.msk [vmem:[#allocation2 + $0x9] sm:$0xf] %vm205_vm6, %v204_v32 }
 0x10c   :  { %273 = shalt.err (!%p270_p4)
}
 0x10d   :  { %s274_s25 = scalar_lea.hbm %s386_s5, 256 }
 0x10e   :  { %p275_p5 = scmp.ne.s32.totalorder %s386_s5, %s274_s25  ;;  %p278_p6 = scmp.lt.u32.totalorder %s274_s25, %s386_s5 }
 0x110   :  { %p280_p7 = pnand %p278_p6, %p275_p5 }
 0x112   :  { %283 = shalt.err (!%p280_p7)
}
 0x113   :  { %s289_s30 = smov 128   ;;  %s290_s6 = smov 8  }
 0x114   :  { %222 = dma.vmem_to_hbm [thread:$0]  %s217_s4, 256, %s386_s5, [#allocation3], %s289_s30, %s289_s30, %s290_s6  }
 0x115   :  { %284 = dma.done.wait [#allocation3], 256  }
 0x116   :  { %285 = vsyncadd [#allocation3], 4294967040 }
 0x117   :  { %226 = vsyncpa [#allocation3], 1 }

</bundles_post_ra>
